<compile_context>
chip_gen: v7x
topology: tpu7x:2x2x1
jax: 0.10.0
libtpu: 0.0.40
codegen_flags: <defaults>
</compile_context>

<pallas_src>
import functools

import jax
import jax.numpy as jnp
from jax import lax
from jax.experimental import pallas as pl
from jax.experimental.pallas import tpu as pltpu


# ----------------------------- helpers -----------------------------

def _vmem_limit_bytes(*shaped, headroom=4):
    """Explicit scoped-VMEM request sized from the actual block sums (+ headroom)."""
    total = 0
    for shape, dtype in shaped:
        n = 1
        for d in shape:
            n *= int(d)
        total += n * jnp.dtype(dtype).itemsize
    return int(min(64 << 20, max(16 << 20, headroom * total)))


# ----------------------------- Pallas kernels -----------------------------

def _linear_kernel(x_ref, w_ref, b_ref, o_ref):
    # bf16 operands, f32 accumulation on the MXU.
    o_ref[...] = (
        jnp.dot(x_ref[...].astype(jnp.bfloat16), w_ref[...].astype(jnp.bfloat16),
                preferred_element_type=jnp.float32)
        + b_ref[...]
    ).astype(o_ref.dtype)


def linear(x2d, w, b):
    """x2d: (M, K) @ w: (K, N) + b: (N,) -> (M, N). Row-tiled grid over M."""
    M, K = x2d.shape
    Kw, N = w.shape
    assert K == Kw
    tm = M
    for cand in (512, 256, 128, 64, 32, 16, 8):
        if M >= cand and M % cand == 0:
            tm = cand
            break
    f32 = jnp.float32
    return pl.pallas_call(
        _linear_kernel,
        grid=(M // tm,),
        out_shape=jax.ShapeDtypeStruct((M, N), f32),
        in_specs=[
            pl.BlockSpec((tm, K), lambda i: (i, 0)),
            pl.BlockSpec((K, N), lambda i: (0, 0)),
            pl.BlockSpec((1, N), lambda i: (0, 0)),
        ],
        out_specs=pl.BlockSpec((tm, N), lambda i: (i, 0)),
        compiler_params=pltpu.CompilerParams(
            dimension_semantics=("parallel",),
            vmem_limit_bytes=_vmem_limit_bytes(
                ((tm, K), f32), ((K, N), f32), ((1, N), f32), ((tm, N), f32))),
    )(x2d, w, b.reshape(1, N))


def linear_seq(x, w, b):
    """x: (B, T, K) -> (B, T, N) via the Pallas linear kernel."""
    B, T, K = x.shape
    y = linear(x.reshape(B * T, K), w, b)
    return y.reshape(B, T, -1)


def _xattn_kernel(xq_ref, xkv_ref, w_ref, b_ref, o_ref, *, scale, d_model):
    # Fused residual single-head cross-attention for the WHOLE batch:
    #   q = xq @ Wq + bq ; k = xkv @ Wk + bk ; v = xkv @ Wv + bv
    #   o = xq + softmax(q k^T / sqrt(D)) v
    D = d_model
    xq = xq_ref[...]                                     # (B, Tq, D) f32
    B = xq.shape[0]
    xq2 = xq.reshape(-1, D).astype(jnp.bfloat16)         # (B*Tq, D)
    xkv2 = xkv_ref[...].reshape(-1, D).astype(jnp.bfloat16)  # (B*Tk, D)

    # Batched projections; packed (D, 3D) weight is read via static REF slices.
    def proj(x2, lo, hi):
        y = (jnp.dot(x2, w_ref[:, lo:hi].astype(jnp.bfloat16),
                     preferred_element_type=jnp.float32)
             + b_ref[:, lo:hi])
        return y.reshape(B, -1, D)

    q = proj(xq2, 0, D)            # (B, Tq, D)
    k = proj(xkv2, D, 2 * D)       # (B, Tk, D)
    v = proj(xkv2, 2 * D, 3 * D)   # (B, Tk, D)

    # Contract on D directly (no transposed K tile), batched over B.
    s = jnp.einsum('bqd,bkd->bqk', q.astype(jnp.bfloat16), k.astype(jnp.bfloat16),
                   preferred_element_type=jnp.float32) * scale
    m = jnp.max(s, axis=-1, keepdims=True)
    p = jnp.exp(s - m)
    denom = jnp.sum(p, axis=-1, keepdims=True)
    pv = jnp.einsum('bqk,bkd->bqd', p.astype(jnp.bfloat16), v.astype(jnp.bfloat16),
                    preferred_element_type=jnp.float32)
    inv = pl.reciprocal(denom, approx=True)              # EUP slot
    o_ref[...] = (xq + pv * inv).astype(o_ref.dtype)


def cross_attention_block(x_q, x_kv, p):
    """Residual single-head cross attention, fully fused, whole batch in one block."""
    B, Tq, D = x_q.shape
    _, Tk, _ = x_kv.shape
    scale = 1.0 / float(D) ** 0.5
    kern = functools.partial(_xattn_kernel, scale=scale, d_model=D)
    f32 = jnp.float32
    return pl.pallas_call(
        kern,
        out_shape=jax.ShapeDtypeStruct((B, Tq, D), f32),
        in_specs=[
            pl.BlockSpec((B, Tq, D), lambda: (0, 0, 0)),
            pl.BlockSpec((B, Tk, D), lambda: (0, 0, 0)),
            pl.BlockSpec((D, 3 * D), lambda: (0, 0)),
            pl.BlockSpec((1, 3 * D), lambda: (0, 0)),
        ],
        out_specs=pl.BlockSpec((B, Tq, D), lambda: (0, 0, 0)),
        compiler_params=pltpu.CompilerParams(
            vmem_limit_bytes=_vmem_limit_bytes(
                ((B, Tq, D), f32), ((B, Tk, D), f32),
                ((D, 3 * D), f32), ((1, 3 * D), f32),
                ((B, Tq, D), f32), ((B, Tq, Tk), f32))),
    )(x_q, x_kv, p["wqkv"], p["bqkv"])


def _dual_tail_kernel(hf_ref, hi_ref, wf_ref, bf_ref, wi_ref, bi_ref, emb_ref, bb_ref,
                      lf_ref, idf_ref, ff_ref, li_ref, idi_ref, fi_ref):
    # Fused decoder tails (findings + impression):
    #   logits = h @ Wvocab + b ; ids = argmax(logits)
    #   feat   = mean_T( softmax(logits) @ bert_emb ) + bert_b
    # bert_emb is loaded & cast once and reused by both tails.
    emb_bf = emb_ref[...].astype(jnp.bfloat16)           # (V, d_bert)
    bb = bb_ref[...]                                     # (1, d_bert)

    def tail(h_ref, w_ref, b_ref, l_ref, id_ref, f_ref):
        B, T, D = h_ref.shape
        V = w_ref.shape[1]
        h2 = h_ref[...].reshape(B * T, D).astype(jnp.bfloat16)
        logits = (jnp.dot(h2, w_ref[...].astype(jnp.bfloat16),
                          preferred_element_type=jnp.float32)
                  + b_ref[...]).reshape(B, T, V)
        l_ref[...] = logits.astype(l_ref.dtype)
        m = jnp.max(logits, axis=-1, keepdims=True)
        # In-kernel argmax (first index of the max) via iota/where/min.
        idx = lax.broadcasted_iota(jnp.int32, logits.shape, 2)
        id_ref[...] = jnp.min(jnp.where(logits == m, idx, V), axis=-1).astype(jnp.int32)
        e = jnp.exp(logits - m)
        probs = e * pl.reciprocal(jnp.sum(e, axis=-1, keepdims=True), approx=True)
        feat = jnp.dot(probs.reshape(B * T, V).astype(jnp.bfloat16), emb_bf,
                       preferred_element_type=jnp.float32)            # (B*T, d_bert)
        f_ref[...] = (jnp.sum(feat.reshape(B, T, -1), axis=1) * (1.0 / T)
                      + bb).astype(f_ref.dtype)

    tail(hf_ref, wf_ref, bf_ref, lf_ref, idf_ref, ff_ref)
    tail(hi_ref, wi_ref, bi_ref, li_ref, idi_ref, fi_ref)


def dual_decoder_tail(h_find, h_imp, params):
    """Both decoder tails in ONE pallas_call.

    Returns (findings_logits, findings_ids, F_F, impression_logits, impression_ids, F_I).
    """
    B, Tf, D = h_find.shape
    Ti = h_imp.shape[1]
    V = params["find_vocab_w"].shape[1]
    d_bert = params["bert_emb"].shape[1]
    f32 = jnp.float32
    # TODO(synk): for production vocab sizes the (D,V)/(V,d_bert) blocks need a tiled
    # V axis with online-softmax accumulators to fit v7x's 64 MiB VMEM.
    vmem = _vmem_limit_bytes(
        ((B, Tf, D), f32), ((B, Ti, D), f32),
        ((D, V), f32), ((1, V), f32), ((D, V), f32), ((1, V), f32),
        ((V, d_bert), f32), ((1, d_bert), f32),
        ((B, Tf, V), f32), ((B, Ti, V), f32), ((B, d_bert), f32), ((B, d_bert), f32))
    return pl.pallas_call(
        _dual_tail_kernel,
        out_shape=(
            jax.ShapeDtypeStruct((B, Tf, V), f32),
            jax.ShapeDtypeStruct((B, Tf), jnp.int32),
            jax.ShapeDtypeStruct((B, d_bert), f32),
            jax.ShapeDtypeStruct((B, Ti, V), f32),
            jax.ShapeDtypeStruct((B, Ti), jnp.int32),
            jax.ShapeDtypeStruct((B, d_bert), f32),
        ),
        in_specs=[
            pl.BlockSpec((B, Tf, D), lambda: (0, 0, 0)),
            pl.BlockSpec((B, Ti, D), lambda: (0, 0, 0)),
            pl.BlockSpec((D, V), lambda: (0, 0)),
            pl.BlockSpec((1, V), lambda: (0, 0)),
            pl.BlockSpec((D, V), lambda: (0, 0)),
            pl.BlockSpec((1, V), lambda: (0, 0)),
            pl.BlockSpec((V, d_bert), lambda: (0, 0)),
            pl.BlockSpec((1, d_bert), lambda: (0, 0)),
        ],
        out_specs=(
            pl.BlockSpec((B, Tf, V), lambda: (0, 0, 0)),
            pl.BlockSpec((B, Tf), lambda: (0, 0)),
            pl.BlockSpec((B, d_bert), lambda: (0, 0)),
            pl.BlockSpec((B, Ti, V), lambda: (0, 0, 0)),
            pl.BlockSpec((B, Ti), lambda: (0, 0)),
            pl.BlockSpec((B, d_bert), lambda: (0, 0)),
        ),
        compiler_params=pltpu.CompilerParams(vmem_limit_bytes=vmem),
    )(h_find, h_imp,
      params["find_vocab_w"], params["find_vocab_b"].reshape(1, V),
      params["imp_vocab_w"], params["imp_vocab_b"].reshape(1, V),
      params["bert_emb"], params["bert_b"].reshape(1, d_bert))


def _classifier_kernel(mem_ref, w_ref, b_ref, o_ref, *, inv_t):
    # Fused mean-pool over sequence + linear classifier (lane-dense padded output).
    pooled = jnp.sum(mem_ref[...], axis=1) * inv_t                     # (B, D)
    o_ref[...] = (
        jnp.dot(pooled.astype(jnp.bfloat16), w_ref[...].astype(jnp.bfloat16),
                preferred_element_type=jnp.float32)
        + b_ref[...]
    ).astype(o_ref.dtype)


def multi_label_classifier(memory, params):
    B, Tm, D = memory.shape
    n_pad = params["cls_w"].shape[1]        # padded to a multiple of 128 lanes
    n_classes = params["n_classes"]
    kern = functools.partial(_classifier_kernel, inv_t=1.0 / float(Tm))
    f32 = jnp.float32
    out = pl.pallas_call(
        kern,
        out_shape=jax.ShapeDtypeStruct((B, n_pad), f32),
        in_specs=[
            pl.BlockSpec((B, Tm, D), lambda: (0, 0, 0)),
            pl.BlockSpec((D, n_pad), lambda: (0, 0)),
            pl.BlockSpec((1, n_pad), lambda: (0, 0)),
        ],
        out_specs=pl.BlockSpec((B, n_pad), lambda: (0, 0)),
        compiler_params=pltpu.CompilerParams(
            vmem_limit_bytes=_vmem_limit_bytes(
                ((B, Tm, D), f32), ((D, n_pad), f32),
                ((1, n_pad), f32), ((B, n_pad), f32))),
    )(memory, params["cls_w"], params["cls_b"].reshape(1, n_pad))
    return out[:, :n_classes]


# ----------------------------- parameter init -----------------------------

def init_params(key, *, patch_dim, d_model, vocab, n_classes, d_bert):
    keys = iter(jax.random.split(key, 64))

    def dense(k_in, k_out):
        w = jax.random.normal(next(keys), (k_in, k_out), jnp.float32) * 0.02
        b = jnp.zeros((k_out,), jnp.float32)
        return w, b

    def attn_params():
        # Packed QKV: (D, 3D) weight, (1, 3D) bias — read via ref slices in-kernel.
        wq, _ = dense(d_model, d_model)
        wk, _ = dense(d_model, d_model)
        wv, _ = dense(d_model, d_model)
        return {"wqkv": jnp.concatenate([wq, wk, wv], axis=1),
                "bqkv": jnp.zeros((1, 3 * d_model), jnp.float32)}

    p = {}
    p["enc_w"], p["enc_b"] = dense(patch_dim, d_model)            # image_encoder
    p["fusion"] = attn_params()                                    # modality_fusion
    p["find_emb"] = jax.random.normal(next(keys), (vocab, d_model)) * 0.02
    p["find_attn"] = attn_params()                                 # findings_decoder
    p["find_vocab_w"], p["find_vocab_b"] = dense(d_model, vocab)
    p["coattn_t"] = attn_params()                                  # co_attention_module
    p["coattn_v"] = attn_params()
    p["imp_emb"] = jax.random.normal(next(keys), (vocab, d_model)) * 0.02
    p["imp_attn"] = attn_params()                                  # impression_decoder
    p["imp_vocab_w"], p["imp_vocab_b"] = dense(d_model, vocab)

    # Classifier weights padded to a multiple of 128 output lanes (lane-dense store).
    n_pad = ((n_classes + 127) // 128) * 128
    cls_w, cls_b = dense(d_model, n_classes)
    p["cls_w"] = jnp.pad(cls_w, ((0, 0), (0, n_pad - n_classes)))
    p["cls_b"] = jnp.pad(cls_b, ((0, n_pad - n_classes),))
    p["n_classes"] = n_classes

    p["bert_emb"] = jax.random.normal(next(keys), (vocab, d_bert)) * 0.02
    p["bert_b"] = jnp.zeros((d_bert,), jnp.float32)                # cxr_bert_feature_extractor
    return p


# ----------------------------- synthetic submodules -----------------------------

def image_encoder(image_nchw, params, patch=4):
    B, C, H, W = image_nchw.shape
    x = image_nchw.reshape(B, C, H // patch, patch, W // patch, patch)
    x = x.transpose(0, 2, 4, 1, 3, 5)
    x = x.reshape(B, (H // patch) * (W // patch), C * patch * patch)
    return linear_seq(x, params["enc_w"], params["enc_b"])          # (B, N, D)


def modality_fusion(F_v, history, params):
    return cross_attention_block(F_v, history, params["fusion"])


def findings_decoder_hidden(fusion_features, findings_ids, params):
    emb = jnp.take(params["find_emb"], findings_ids, axis=0)        # (B, T_f, D)
    return cross_attention_block(emb, fusion_features, params["find_attn"])


def co_attention_module(F_t, F_v, params):
    F_t_prime = cross_attention_block(F_t, F_v, params["coattn_t"])
    F_v_prime = cross_attention_block(F_v, F_t, params["coattn_v"])
    return F_t_prime, F_v_prime


def impression_decoder_hidden(F_v_prime, F_t_prime, F_t, impression_ids, params):
    memory = jnp.concatenate([F_v_prime, F_t_prime, F_t], axis=1)   # (B, N+2T_f, D)
    emb = jnp.take(params["imp_emb"], impression_ids, axis=0)       # (B, T_i, D)
    hidden = cross_attention_block(emb, memory, params["imp_attn"])
    return memory, hidden


# ----------------------------- HiMrGn forward -----------------------------

def himrgn_forward(image, findings, impression, history, params,
                   train_stage=2, mode="train"):
    # TODO(synk): real CXR-BERT tokenization / pretrained encoding has no Pallas
    # equivalent; replaced by softmax-weighted learned embedding + in-kernel argmax ids.
    if train_stage == 1:
        F_v = image_encoder(image[0], params)
        F_t = findings_decoder_hidden(F_v, findings, params)
        findings_logits = linear_seq(F_t, params["find_vocab_w"], params["find_vocab_b"])
        findings_text = jnp.argmax(findings_logits, axis=-1).astype(jnp.int32)
        return {"findings": findings_logits, "findings_text": findings_text,
                "impression": None, "impression_text": None,
                "F_F": None, "F_I": None, "class_logits": None}
    elif train_stage == 2:
        F_v = image_encoder(image[0], params)
        fusion_features = modality_fusion(F_v, history, params)
        F_t = findings_decoder_hidden(fusion_features, findings, params)
        F_t_prime, F_v_prime = co_attention_module(F_t, F_v, params)
        memory, imp_hidden = impression_decoder_hidden(
            F_v_prime, F_t_prime, F_t, impression, params)
        class_logits = multi_label_classifier(memory, params)
        # Single fused tail kernel: vocab logits + argmax + softmax + bert-embed
        # + mean-pool for BOTH decoders (bert_emb loaded once).
        (findings_logits, findings_text, F_F,
         impression_logits, impression_text, F_I) = dual_decoder_tail(
            F_t, imp_hidden, params)
        return {"findings": findings_logits, "findings_text": findings_text,
                "impression": impression_logits, "impression_text": impression_text,
                "F_F": F_F, "F_I": F_I, "class_logits": class_logits}


# ----------------------------- demo -----------------------------

if __name__ == "__main__":
    key = jax.random.PRNGKey(0)
    k_img, k_hist, k_f, k_i, k_p = jax.random.split(key, 5)

    B, C, H, W, patch = 2, 3, 16, 16, 4
    D, T_f, T_i, T_h = 32, 8, 8, 8
    vocab, n_classes, d_bert = 64, 14, 32
    patch_dim = C * patch * patch

    img = jax.random.normal(k_img, (B, C, H, W), jnp.float32)       # NCHW
    history = jax.random.normal(k_hist, (B, T_h, D), jnp.float32)
    findings = jax.random.randint(k_f, (B, T_f), 0, vocab, jnp.int32)
    impression = jax.random.randint(k_i, (B, T_i), 0, vocab, jnp.int32)

    params = init_params(k_p, patch_dim=patch_dim, d_model=D, vocab=vocab,
                         n_classes=n_classes, d_bert=d_bert)

    out = himrgn_forward((img,), findings, impression, history, params,
                         train_stage=2, mode="train")

    for v in jax.tree_util.tree_leaves(out):
        jax.block_until_ready(v)

    assert out["findings"].shape == (B, T_f, vocab)
    assert out["impression"].shape == (B, T_i, vocab)
    assert out["findings_text"].shape == (B, T_f) and out["findings_text"].dtype == jnp.int32
    assert out["impression_text"].shape == (B, T_i) and out["impression_text"].dtype == jnp.int32
    assert out["class_logits"].shape == (B, n_classes)
    assert out["F_F"].shape == (B, d_bert)
    assert out["F_I"].shape == (B, d_bert)

    print("KERNEL_OK")
</pallas_src>

<mosaic_0001>
module attributes {stable_mosaic.version = 11 : i64} {
  func.func @_linear_kernel(%arg0: i32, %arg1: memref<32x48xf32, #tpu.memory_space<vmem>>, %arg2: memref<48x32xf32, #tpu.memory_space<vmem>>, %arg3: memref<1x32xf32, #tpu.memory_space<vmem>>, %arg4: memref<32x32xf32, #tpu.memory_space<vmem>>) attributes {dimension_semantics = [#tpu.dimension_semantics<parallel>], iteration_bounds = array<i64: 1>, scalar_prefetch = 0 : i64, scratch_operands = 0 : i64, tpu.core_type = #tpu.core_type<tc>, window_params = [{transform_indices = @transform_0, window_bounds = array<i64: 32, 48>}, {pipeline_mode = #tpu.pipeline_mode<synchronous>, transform_indices = @transform_1, window_bounds = array<i64: 48, 32>}, {pipeline_mode = #tpu.pipeline_mode<synchronous>, transform_indices = @transform_2, window_bounds = array<i64: 1, 32>}, {transform_indices = @transform_3, window_bounds = array<i64: 32, 32>}]} {
    %c0 = arith.constant 0 : index
    %c0_0 = arith.constant 0 : index
    %0 = vector.load %arg1[%c0, %c0_0] : memref<32x48xf32, #tpu.memory_space<vmem>>, vector<32x48xf32>
    %1 = arith.truncf %0 : vector<32x48xf32> to vector<32x48xbf16>
    %c0_1 = arith.constant 0 : index
    %c0_2 = arith.constant 0 : index
    %2 = vector.load %arg2[%c0_1, %c0_2] : memref<48x32xf32, #tpu.memory_space<vmem>>, vector<48x32xf32>
    %3 = arith.truncf %2 : vector<48x32xf32> to vector<48x32xbf16>
    %cst = arith.constant dense<0.000000e+00> : vector<32x32xf32>
    %4 = tpu.matmul %1, %3, %cst {dimension_numbers = #tpu.dot_dimension_numbers<[1], [0], [0], [1], [0, 0, 1, 1], [], []>} : vector<32x48xbf16>, vector<48x32xbf16>, vector<32x32xf32> -> vector<32x32xf32>
    %c0_3 = arith.constant 0 : index
    %c0_4 = arith.constant 0 : index
    %5 = vector.load %arg3[%c0_3, %c0_4] : memref<1x32xf32, #tpu.memory_space<vmem>>, vector<1x32xf32>
    %6 = vector.broadcast %5 : vector<1x32xf32> to vector<32x32xf32>
    %7 = arith.addf %4, %6 : vector<32x32xf32>
    %c0_5 = arith.constant 0 : index
    %c0_6 = arith.constant 0 : index
    %8 = vector.load %arg4[%c0_5, %c0_6] : memref<32x32xf32, #tpu.memory_space<vmem>>, vector<32x32xf32>
    tpu.vector_store %arg4[%c0_5, %c0_6], %7 {strides = array<i32>} : memref<32x32xf32, #tpu.memory_space<vmem>>, vector<32x32xf32>,
    return
  }
  func.func @transform_0(%arg0: i32) -> (i32, i32) {
    %c0_i32 = arith.constant 0 : i32
    %c0_i32_0 = arith.constant 0 : i32
    return %arg0, %c0_i32 : i32, i32
  }
  func.func @transform_1(%arg0: i32) -> (i32, i32) {
    %c0_i32 = arith.constant 0 : i32
    %c0_i32_0 = arith.constant 0 : i32
    %c0_i32_1 = arith.constant 0 : i32
    return %c0_i32, %c0_i32_0 : i32, i32
  }
  func.func @transform_2(%arg0: i32) -> (i32, i32) {
    %c0_i32 = arith.constant 0 : i32
    %c0_i32_0 = arith.constant 0 : i32
    %c0_i32_1 = arith.constant 0 : i32
    return %c0_i32, %c0_i32_0 : i32, i32
  }
  func.func @transform_3(%arg0: i32) -> (i32, i32) {
    %c0_i32 = arith.constant 0 : i32
    %c0_i32_0 = arith.constant 0 : i32
    return %arg0, %c0_i32 : i32, i32
  }
}

</mosaic_0001>

<bundles_post_ra>
// kernel: tpu_custom_call.1
= control target key start
LH: loop header
LB: loop body
LE: loop exit
PB: predicated region body
PF: predicated region fallthrough
CT: control target
= control target key end

     0   :  { %vm38_vm0 = vcmask 392192   ;;  %s228_s0 = inlined_call_operand.vmem [shape: f32[32,48], index: 0, kind: input, shape index: {}]   ;;  %s229_s1 = inlined_call_operand.vmem [shape: f32[48,32], index: 1, kind: input, shape index: {}]   ;;  %s230_s2 = inlined_call_operand.vmem [shape: f32[1,32], index: 2, kind: input, shape index: {}]   ;;  %s231_s3 = inlined_call_operand.hbm [shape: f32[32,32], index: 3, kind: output, shape index: {}]  }
   0x1   :  { %v22_v0 = vld [vmem:[%s229_s1] sm:$0xff]  ;;  %v23_v1 = vld [vmem:[%s229_s1 + $0x8] sm:$0xff]  ;;  %v24_v2 = vld [vmem:[%s229_s1 + $0x10] sm:$0xff] }
   0x2   :  { %v28_v3 = vpack.c.bf16 %v23_v1, %v22_v0  ;;  %v25_v4 = vld [vmem:[%s229_s1 + $0x18] sm:$0xff]  ;;  %v26_v5 = vld [vmem:[%s229_s1 + $0x20] sm:$0xff]  ;;  %v27_v7 = vld [vmem:[%s229_s1 + $0x28] sm:$0xff] }
   0x3   :  { %v29_v6 = vpack.c.bf16 %v25_v4, %v24_v2  ;;  %v16_v8 = vld [vmem:[%s228_s0] sm:$0xff]  ;;  %v17_v9 = vld [vmem:[%s228_s0 + $0x8] sm:$0xff] }
   0x4   :  { %123 = vmatprep.subr.bf16.mxu0 %v28_v3  ;;  %v20_v10 = vpack.c.bf16 %v17_v9, %v16_v8 }
   0x5   :  { %8 = vsyncpa [#allocation3], 0  ;;  %124 = vmatpush3.bf16.msra.mxu0 %v28_v3  ;;  %v30_v11 = vpack.c.bf16 %v27_v7, %v26_v5  ;;  %v18_v12 = vld [vmem:[%s228_s0 + $0x10] sm:$0xff]  ;;  %v19_v13 = vld [vmem:[%s228_s0 + $0x18] sm:$0xff]  ;;  %vm94_vm1 = vcmask 261120   ;;  %s160_s6 = smov [#allocation2]  }
   0x6   :  { %125 = vmatprep.subr.bf16.mxu0 %v29_v6  ;;  %129 = vmatprep.mubr.msk.bf16.mxu0 %vm38_vm0, %v20_v10  ;;  %v21_v14 = vpack.c.bf16 %v19_v13, %v18_v12  ;;  %v115_v15 = vld [vmem:[%s230_s2] ss:$0 sm:$0xff]  ;;  %s104_s7 = sshll.u32 %s160_s6, 4  ;;  %s105_s7 = int_to_ptr.vmem [resolvable:$true] %s104_s7 }
   0x7   :  { %s136_s0 = scalar_lea.vmem %s105_s7, 512  ;;  %p141_p1 = scmp.lt.s32.totalorder %s105_s7, %s105_s7 }
   0x8   :  { %p137_p0 = scmp.ne.s32.totalorder %s105_s7, %s136_s0  ;;  %p142_p2 = scmp.lt.s32.totalorder %s136_s0, %s136_s0 }
   0x9   :  { %126 = vmatpush3.bf16.msra.mxu0 %v29_v6 }
   0xa   :  { %127 = vmatprep.subr.bf16.mxu0 %v30_v11  ;;  %p143_p3 = por %p142_p2, %p141_p1 }
   0xc   :  { %p144_p4 = pnand %p143_p3, %p137_p0 }
   0xd   :  { %128 = vmatpush3.bf16.msra.mxu0 %v30_v11 }
  0x10   :  { %130 = vmatmul.mubr.msk.bf16.vlgmr.msra.gmra.mrb[0].mxu0 %vm38_vm0, %v21_v14 }
  0xe3   :  { %v131_v16 = vpop.f32.mrb[0].mxu0 }
  0xe4   :  { %v88_v17 = vadd.f32 %v131_v16, %v115_v15  ;;  %v79_v18 = vpop.f32.mrb[1].mxu0 }
  0xe5   :  { %v80_v19 = vadd.f32 %v115_v15, %v79_v18  ;;  %v132_v20 = vpop.f32.mrb[2].mxu0 }
  0xe6   :  { %97 = vst.msk [vmem:[#allocation2 + $0x10] sm:$0xff] %vm94_vm1, %v88_v17  ;;  %v91_v21 = vadd.f32 %v132_v20, %v115_v15  ;;  %v82_v22 = vpop.f32.mrb[3].mxu0 }
  0xe7   :  { %95 = vst.msk [vmem:[#allocation2] sm:$0xff] %vm94_vm1, %v80_v19  ;;  %v83_v23 = vadd.f32 %v115_v15, %v82_v22 }
  0xe8   :  { %98 = vst.msk [vmem:[#allocation2 + $0x18] sm:$0xff] %vm94_vm1, %v91_v21 }
  0xe9   :  { %96 = vst.msk [vmem:[#allocation2 + $0x8] sm:$0xff] %vm94_vm1, %v83_v23 }
  0xea   :  { %147 = shalt.err (!%p144_p4)
}
  0xeb   :  { %s148_s9 = scalar_lea.hbm %s231_s3, 512 }
  0xec   :  { %p149_p5 = scmp.ne.s32.totalorder %s231_s3, %s148_s9  ;;  %p152_p6 = scmp.lt.u32.totalorder %s148_s9, %s231_s3 }
  0xee   :  { %p154_p7 = pnand %p152_p6, %p149_p5 }
  0xf0   :  { %157 = shalt.err (!%p154_p7)
}
  0xf1   :  { %s161_s14 = smov 128   ;;  %s162_s15 = smov 8  }
  0xf2   :  { %110 = dma.vmem_to_hbm [thread:$0]  %s105_s7, 512, %s231_s3, [#allocation3], %s161_s14, %s161_s14, %s162_s15  }
  0xf3   :  { %158 = dma.done.wait [#allocation3], 512  }
  0xf4   :  { %159 = vsyncadd [#allocation3], 4294966784 }
  0xf5   :  { %114 = vsyncpa [#allocation3], 1 }

</bundles_post_ra>
